<compile_context>
chip_gen: v7x
topology: tpu7x:2x2x1
jax: 0.10.0
libtpu: 0.0.40
codegen_flags: <defaults>
</compile_context>

<pallas_src>
import functools
import numpy as np
import jax
import jax.numpy as jnp
from jax.experimental import pallas as pl
from jax.experimental.pallas import tpu as pltpu

TWO_PI = 2.0 * np.pi
N_TIMESTEPS = 50          # np.linspace(0, 1, 50) time grid of the trajectory
ORIENT_DOF = 2            # y[:, 2, :] is the orientation channel
LANE = 128
SUBLANE = 8
MAX_TILE_LANES = 2048     # flattened B*D rows per grid step (lane axis); ~<2 MiB/step


def _round_up(x: int, m: int) -> int:
    return (x + m - 1) // m * m


def _make_phi(n_kernels: int, n_steps: int = N_TIMESTEPS) -> np.ndarray:
    """Deterministic normalized Gaussian-RBF regression matrix [n_kernels, n_steps].

    # TODO(synk): stand-in for MovementPrimitive.regress_vec (class not provided);
    # deterministic given n_kernels but not bit-identical to the original basis.
    """
    s = np.linspace(0.0, 1.0, n_steps)
    c = np.linspace(0.0, 1.0, n_kernels)
    dc = c[1] - c[0] if n_kernels > 1 else 1.0
    h = 1.0 / (2.0 * dc * dc)
    psi = np.exp(-h * (s[None, :] - c[:, None]) ** 2)
    phi = psi / np.sum(psi, axis=0, keepdims=True)
    return phi.astype(np.float32)


def _tensorcores_per_chip() -> int:
    """Best-effort TC-per-chip sniff (v7x has 2); wrong answers only affect perf."""
    try:
        kind = jax.devices()[0].device_kind.lower()
    except Exception:
        return 1
    return 2 if ("v7" in kind or "7x" in kind) else 1


def _smooth_l1_tile_partial(wp_ref, wt_ref, phip_ref, phit_ref, *,
                            beta, n_dofs, precision):
    """Return an [8, 128] f32 slab of SmoothL1 partial sums for this lane tile."""
    # diff^T[t, r] = (W_pred @ Phi_pred - W_target @ Phi_target)^T for the tile's rows.
    diff = (jnp.dot(phip_ref[...], wp_ref[...],
                    preferred_element_type=jnp.float32, precision=precision)
            - jnp.dot(phit_ref[...], wt_ref[...],
                      preferred_element_type=jnp.float32, precision=precision))
    t_pad, tile_r = diff.shape

    # Orientation dof: flattened row r = b * n_dofs + d, so d = r % n_dofs.
    # Applied post-matmul in f32 (exact w.r.t. the PyTorch post-matmul scaling path).
    col = (jax.lax.broadcasted_iota(jnp.int32, (1, tile_r), 1)
           + pl.program_id(0) * tile_r)
    scale = jnp.where(col % n_dofs == ORIENT_DOF,
                      jnp.float32(1.0 / TWO_PI), jnp.float32(1.0))
    diff = diff * scale

    ad = jnp.abs(diff)
    elem = jnp.where(ad < beta, (0.5 / beta) * diff * diff, ad - 0.5 * beta)

    # Padded timestep rows (zero Phi) and padded row lanes (zero weights) give elem==0,
    # so every true element is counted exactly once.  All slices below are whole-vreg
    # (sublane multiples of 8, lane multiples of 128) -> pure VALU adds, no relayout.
    acc8 = elem[0:SUBLANE, :]
    for s in range(1, t_pad // SUBLANE):
        acc8 = acc8 + elem[s * SUBLANE:(s + 1) * SUBLANE, :]
    acc = acc8[:, 0:LANE]
    for j in range(1, tile_r // LANE):
        acc = acc + acc8[:, j * LANE:(j + 1) * LANE]
    return acc


def _loss_accum_kernel(wp_ref, wt_ref, phip_ref, phit_ref, out_ref, *,
                       beta, n_dofs, precision):
    """In-kernel accumulator variant (single-TC chips): out block revisited each step."""
    partial = _smooth_l1_tile_partial(wp_ref, wt_ref, phip_ref, phit_ref,
                                      beta=beta, n_dofs=n_dofs, precision=precision)

    @pl.when(pl.program_id(0) == 0)
    def _():
        out_ref[...] = jnp.zeros_like(out_ref)

    out_ref[...] += partial


def _loss_partials_kernel(wp_ref, wt_ref, phip_ref, phit_ref, out_ref, *,
                          beta, n_dofs, precision):
    """Per-tile partials variant (multi-TC chips, 'parallel' grid axis)."""
    partial = _smooth_l1_tile_partial(wp_ref, wt_ref, phip_ref, phit_ref,
                                      beta=beta, n_dofs=n_dofs, precision=precision)
    out_ref[...] = partial[None]


def resnet_dmp_orient_traj_loss(pred_weights: jnp.ndarray,
                                target_weights: jnp.ndarray,
                                beta: float = 0.5,
                                precision=None,
                                variant: str | None = None,
                                max_tile_lanes: int = MAX_TILE_LANES) -> jnp.ndarray:
    """pred_weights: [B, D, Kp], target_weights: [B, D, Kt] -> scalar f32 loss.

    Wrap in jax.jit in production so the tiny layout ops fuse into one prep fusion.
    """
    B, D, Kp = pred_weights.shape
    Bt, Dt, Kt = target_weights.shape
    assert (B, D) == (Bt, Dt)

    R = B * D
    T = N_TIMESTEPS
    T_pad = _round_up(T, SUBLANE)                         # 50 -> 56 sublanes

    w_dtype = jnp.promote_types(pred_weights.dtype, target_weights.dtype)
    if precision is None:
        # HIGHEST only where the 1e-5 tolerance demands it (f32 inputs); bf16 inputs
        # take the cheap single-pass MXU path.
        precision = (jax.lax.Precision.HIGHEST if w_dtype == jnp.dtype(jnp.float32)
                     else jax.lax.Precision.DEFAULT)

    # Tile the flattened B*D rows along the lane axis; give each TensorCore work on
    # multi-TC chips, otherwise use the fattest tile that covers R.
    n_tc = _tensorcores_per_chip()
    tile_lanes = int(min(_round_up(max_tile_lanes, LANE),
                         _round_up(-(-R // n_tc), LANE)))
    R_pad = _round_up(R, tile_lanes)
    num_tiles = R_pad // tile_lanes
    if variant is None:
        variant = "partials" if (n_tc > 1 and num_tiles > 1) else "accumulate"

    # Transposed layout: [K, B*D] with rows on the lane axis (zero-pad the remainder).
    wpT = pred_weights.reshape(R, Kp).T.astype(w_dtype)
    wtT = target_weights.reshape(R, Kt).T.astype(w_dtype)
    if R_pad != R:
        wpT = jnp.pad(wpT, ((0, 0), (0, R_pad - R)))
        wtT = jnp.pad(wtT, ((0, 0), (0, R_pad - R)))

    # Compile-time-constant transposed bases, zero-padded 50 -> 56 timestep sublanes.
    phipT_np = np.zeros((T_pad, Kp), np.float32); phipT_np[:T] = _make_phi(Kp).T
    phitT_np = np.zeros((T_pad, Kt), np.float32); phitT_np[:T] = _make_phi(Kt).T
    phipT = jnp.asarray(phipT_np, dtype=w_dtype)
    phitT = jnp.asarray(phitT_np, dtype=w_dtype)

    in_specs = [
        pl.BlockSpec((Kp, tile_lanes), lambda i: (0, i)),     # pred weights (lane tile)
        pl.BlockSpec((Kt, tile_lanes), lambda i: (0, i)),     # target weights
        pl.BlockSpec((T_pad, Kp), lambda i: (0, 0)),          # Phi_pred^T: fetched once
        pl.BlockSpec((T_pad, Kt), lambda i: (0, 0)),          # Phi_target^T: fetched once
    ]

    if variant == "accumulate":
        kernel = functools.partial(_loss_accum_kernel, beta=float(beta),
                                   n_dofs=D, precision=precision)
        out_shape = jax.ShapeDtypeStruct((SUBLANE, LANE), jnp.float32)
        out_specs = pl.BlockSpec((SUBLANE, LANE), lambda i: (0, 0))
        dim_sem = ("arbitrary",)
    elif variant == "partials":
        kernel = functools.partial(_loss_partials_kernel, beta=float(beta),
                                   n_dofs=D, precision=precision)
        out_shape = jax.ShapeDtypeStruct((num_tiles, SUBLANE, LANE), jnp.float32)
        out_specs = pl.BlockSpec((1, SUBLANE, LANE), lambda i: (i, 0, 0))
        dim_sem = ("parallel",)
    else:
        raise ValueError(f"unknown variant {variant!r}")

    partial_sums = pl.pallas_call(
        kernel,
        grid=(num_tiles,),
        out_shape=out_shape,
        in_specs=in_specs,
        out_specs=out_specs,
        compiler_params=pltpu.CompilerParams(dimension_semantics=dim_sem),
    )(wpT, wtT, phipT, phitT)

    # Mean over the TRUE element count; padded rows/lanes contribute exactly 0.
    return jnp.sum(partial_sums) / jnp.float32(B * D * T)


def _reference_loss(pred_weights, target_weights, beta=0.5):
    """Pure-JAX mirror of the PyTorch path (separate matmuls, post-matmul scale)."""
    phi_p = jnp.asarray(_make_phi(pred_weights.shape[2]))
    phi_t = jnp.asarray(_make_phi(target_weights.shape[2]))
    hp = jax.lax.Precision.HIGHEST
    y_pred = jnp.einsum('bdk,kt->bdt', pred_weights.astype(jnp.float32), phi_p,
                        precision=hp)
    y_targ = jnp.einsum('bdk,kt->bdt', target_weights.astype(jnp.float32), phi_t,
                        precision=hp)
    y_pred = y_pred.at[:, ORIENT_DOF, :].divide(TWO_PI)
    y_targ = y_targ.at[:, ORIENT_DOF, :].divide(TWO_PI)
    d = y_pred - y_targ
    ad = jnp.abs(d)
    elem = jnp.where(ad < beta, 0.5 * d * d / beta, ad - 0.5 * beta)
    return jnp.mean(elem)


if __name__ == "__main__":
    # TODO(synk): the ResNet18 backbone (IntermediateLayerGetter), the MDNHead
    # linear/softmax/softplus layers, and the torch.kthvalue mixture-component gather
    # of ResNetMDDMP.forward are not ported; this kernel covers the DMP
    # weights -> trajectory (mp_weights_to_traj) + SmoothL1 trajectory-loss path.
    # TODO(synk): img_size scaling of dofs 0:2 assumed default [1., 1.] (identity).
    key = jax.random.PRNGKey(0)
    k1, k2, k3, k4 = jax.random.split(key, 4)

    # Small config: [batch, dofs(x, y, orientation), pred kernels / target kernels].
    B, D, Kp, Kt = 2, 3, 8, 10
    pred_w = jax.random.normal(k1, (B, D, Kp), dtype=jnp.float32)
    targ_w = jax.random.normal(k2, (B, D, Kt), dtype=jnp.float32)

    loss = jax.block_until_ready(resnet_dmp_orient_traj_loss(pred_w, targ_w))
    ref = jax.block_until_ready(_reference_loss(pred_w, targ_w))
    assert np.allclose(np.asarray(loss), np.asarray(ref), rtol=1e-5, atol=1e-5), (loss, ref)

    # Larger config forcing multiple grid tiles + lane padding; exercise both output
    # variants (accumulator for single-TC chips, partials for multi-TC chips).
    B2 = 96
    pred2 = jax.random.normal(k3, (B2, D, Kp), dtype=jnp.float32)
    targ2 = jax.random.normal(k4, (B2, D, Kt), dtype=jnp.float32)
    ref2 = jax.block_until_ready(_reference_loss(pred2, targ2))
    for variant in ("accumulate", "partials"):
        loss2 = jax.block_until_ready(
            resnet_dmp_orient_traj_loss(pred2, targ2, variant=variant,
                                        max_tile_lanes=128))
        assert np.allclose(np.asarray(loss2), np.asarray(ref2),
                           rtol=1e-5, atol=1e-5), (variant, loss2, ref2)

    print("KERNEL_OK")
</pallas_src>

<mosaic_0001>
module attributes {stable_mosaic.version = 11 : i64} {
  func.func @_loss_accum_kernel(%arg0: i32, %arg1: memref<8x128xf32, #tpu.memory_space<vmem>>, %arg2: memref<10x128xf32, #tpu.memory_space<vmem>>, %arg3: memref<56x8xf32, #tpu.memory_space<vmem>>, %arg4: memref<56x10xf32, #tpu.memory_space<vmem>>, %arg5: memref<8x128xf32, #tpu.memory_space<vmem>>) attributes {dimension_semantics = [#tpu.dimension_semantics<arbitrary>], iteration_bounds = array<i64: 1>, scalar_prefetch = 0 : i64, scratch_operands = 0 : i64, tpu.core_type = #tpu.core_type<tc>, window_params = [{transform_indices = @transform_0, window_bounds = array<i64: 8, 128>}, {transform_indices = @transform_1, window_bounds = array<i64: 10, 128>}, {pipeline_mode = #tpu.pipeline_mode<synchronous>, transform_indices = @transform_2, window_bounds = array<i64: 56, 8>}, {pipeline_mode = #tpu.pipeline_mode<synchronous>, transform_indices = @transform_3, window_bounds = array<i64: 56, 10>}, {pipeline_mode = #tpu.pipeline_mode<synchronous>, transform_indices = @transform_4, window_bounds = array<i64: 8, 128>}]} {
    %c0 = arith.constant 0 : index
    %c0_0 = arith.constant 0 : index
    %0 = vector.load %arg3[%c0, %c0_0] : memref<56x8xf32, #tpu.memory_space<vmem>>, vector<56x8xf32>
    %c0_1 = arith.constant 0 : index
    %c0_2 = arith.constant 0 : index
    %1 = vector.load %arg1[%c0_1, %c0_2] : memref<8x128xf32, #tpu.memory_space<vmem>>, vector<8x128xf32>
    %cst = arith.constant dense<0.000000e+00> : vector<56x128xf32>
    %2 = tpu.matmul %0, %1, %cst {dimension_numbers = #tpu.dot_dimension_numbers<[1], [0], [0], [1], [0, 0, 1, 1], [], []>, precision = #tpu.contract_precision<fp32>} : vector<56x8xf32>, vector<8x128xf32>, vector<56x128xf32> -> vector<56x128xf32>
    %c0_3 = arith.constant 0 : index
    %c0_4 = arith.constant 0 : index
    %3 = vector.load %arg4[%c0_3, %c0_4] : memref<56x10xf32, #tpu.memory_space<vmem>>, vector<56x10xf32>
    %c0_5 = arith.constant 0 : index
    %c0_6 = arith.constant 0 : index
    %4 = vector.load %arg2[%c0_5, %c0_6] : memref<10x128xf32, #tpu.memory_space<vmem>>, vector<10x128xf32>
    %cst_7 = arith.constant dense<0.000000e+00> : vector<56x128xf32>
    %5 = tpu.matmul %3, %4, %cst_7 {dimension_numbers = #tpu.dot_dimension_numbers<[1], [0], [0], [1], [0, 0, 1, 1], [], []>, precision = #tpu.contract_precision<fp32>} : vector<56x10xf32>, vector<10x128xf32>, vector<56x128xf32> -> vector<56x128xf32>
    %6 = arith.subf %2, %5 : vector<56x128xf32>
    %7 = tpu.iota {dimensions = array<i32: 1>} : vector<1x128xi32>
    %c128_i32 = arith.constant 128 : i32
    %8 = arith.muli %arg0, %c128_i32 : i32
    %9 = vector.broadcast %8 : i32 to vector<1x128xi32>
    %10 = arith.addi %7, %9 : vector<1x128xi32>
    %c3_i32 = arith.constant 3 : i32
    %c0_i32 = arith.constant 0 : i32
    %11 = arith.cmpi eq, %c3_i32, %c0_i32 : i32
    %c1_i32 = arith.constant 1 : i32
    %12 = arith.select %11, %c1_i32, %c3_i32 : i32
    %13 = vector.broadcast %12 : i32 to vector<1x128xi32>
    %14 = arith.remsi %10, %13 : vector<1x128xi32>
    %c0_i32_8 = arith.constant 0 : i32
    %15 = vector.broadcast %c0_i32_8 : i32 to vector<1x128xi32>
    %16 = arith.cmpi ne, %14, %15 : vector<1x128xi32>
    %c0_i32_9 = arith.constant 0 : i32
    %17 = vector.broadcast %c0_i32_9 : i32 to vector<1x128xi32>
    %18 = arith.cmpi slt, %14, %17 : vector<1x128xi32>
    %c0_i32_10 = arith.constant 0 : i32
    %19 = arith.cmpi slt, %12, %c0_i32_10 : i32
    %20 = vector.broadcast %19 : i1 to vector<1x128xi1>
    %21 = vector.broadcast %20 : vector<1x128xi1> to vector<1x128xi1>
    %22 = arith.xori %18, %21 : vector<1x128xi1>
    %23 = arith.andi %22, %16 : vector<1x128xi1>
    %24 = vector.broadcast %12 : i32 to vector<1x128xi32>
    %25 = arith.addi %14, %24 : vector<1x128xi32>
    %26 = arith.select %23, %25, %14 : vector<1x128xi1>, vector<1x128xi32>
    %c2_i32 = arith.constant 2 : i32
    %27 = vector.broadcast %c2_i32 : i32 to vector<1x128xi32>
    %28 = arith.cmpi eq, %26, %27 : vector<1x128xi32>
    %cst_11 = arith.constant 0.159154937 : f32
    %cst_12 = arith.constant 1.000000e+00 : f32
    %29 = vector.broadcast %cst_11 : f32 to vector<1x128xf32>
    %30 = vector.broadcast %cst_12 : f32 to vector<1x128xf32>
    %31 = arith.select %28, %29, %30 : vector<1x128xi1>, vector<1x128xf32>
    %32 = vector.broadcast %31 : vector<1x128xf32> to vector<56x128xf32>
    %33 = arith.mulf %6, %32 : vector<56x128xf32>
    %34 = math.absf %33 : vector<56x128xf32>
    %cst_13 = arith.constant 5.000000e-01 : f32
    %35 = vector.broadcast %cst_13 : f32 to vector<56x128xf32>
    %36 = arith.cmpf olt, %34, %35 : vector<56x128xf32>
    %cst_14 = arith.constant 1.000000e+00 : f32
    %37 = vector.broadcast %cst_14 : f32 to vector<56x128xf32>
    %38 = arith.mulf %37, %33 : vector<56x128xf32>
    %39 = arith.mulf %38, %33 : vector<56x128xf32>
    %cst_15 = arith.constant 2.500000e-01 : f32
    %40 = vector.broadcast %cst_15 : f32 to vector<56x128xf32>
    %41 = arith.subf %34, %40 : vector<56x128xf32>
    %42 = arith.select %36, %39, %41 : vector<56x128xi1>, vector<56x128xf32>
    %43 = vector.extract_strided_slice %42 {offsets = [0, 0], sizes = [8, 128], strides = [1, 1]} : vector<56x128xf32> to vector<8x128xf32>
    %44 = vector.extract_strided_slice %42 {offsets = [8, 0], sizes = [8, 128], strides = [1, 1]} : vector<56x128xf32> to vector<8x128xf32>
    %45 = arith.addf %43, %44 : vector<8x128xf32>
    %46 = vector.extract_strided_slice %42 {offsets = [16, 0], sizes = [8, 128], strides = [1, 1]} : vector<56x128xf32> to vector<8x128xf32>
    %47 = arith.addf %45, %46 : vector<8x128xf32>
    %48 = vector.extract_strided_slice %42 {offsets = [24, 0], sizes = [8, 128], strides = [1, 1]} : vector<56x128xf32> to vector<8x128xf32>
    %49 = arith.addf %47, %48 : vector<8x128xf32>
    %50 = vector.extract_strided_slice %42 {offsets = [32, 0], sizes = [8, 128], strides = [1, 1]} : vector<56x128xf32> to vector<8x128xf32>
    %51 = arith.addf %49, %50 : vector<8x128xf32>
    %52 = vector.extract_strided_slice %42 {offsets = [40, 0], sizes = [8, 128], strides = [1, 1]} : vector<56x128xf32> to vector<8x128xf32>
    %53 = arith.addf %51, %52 : vector<8x128xf32>
    %54 = vector.extract_strided_slice %42 {offsets = [48, 0], sizes = [8, 128], strides = [1, 1]} : vector<56x128xf32> to vector<8x128xf32>
    %55 = arith.addf %53, %54 : vector<8x128xf32>
    %c0_i32_16 = arith.constant 0 : i32
    %56 = arith.cmpi eq, %arg0, %c0_i32_16 : i32
    %57 = arith.extui %56 : i1 to i32
    %c0_i32_17 = arith.constant 0 : i32
    %58 = arith.cmpi ne, %57, %c0_i32_17 : i32
    scf.if %58 {
      %cst_22 = arith.constant 0.000000e+00 : f32
      %62 = vector.broadcast %cst_22 : f32 to vector<8x128xf32>
      %c0_23 = arith.constant 0 : index
      %c0_24 = arith.constant 0 : index
      %63 = vector.load %arg5[%c0_23, %c0_24] : memref<8x128xf32, #tpu.memory_space<vmem>>, vector<8x128xf32>
      tpu.vector_store %arg5[%c0_23, %c0_24], %62 {strides = array<i32>} : memref<8x128xf32, #tpu.memory_space<vmem>>, vector<8x128xf32>,
    } else {
    }
    %c0_18 = arith.constant 0 : index
    %c0_19 = arith.constant 0 : index
    %59 = vector.load %arg5[%c0_18, %c0_19] : memref<8x128xf32, #tpu.memory_space<vmem>>, vector<8x128xf32>
    %60 = arith.addf %59, %55 : vector<8x128xf32>
    %c0_20 = arith.constant 0 : index
    %c0_21 = arith.constant 0 : index
    %61 = vector.load %arg5[%c0_20, %c0_21] : memref<8x128xf32, #tpu.memory_space<vmem>>, vector<8x128xf32>
    tpu.vector_store %arg5[%c0_20, %c0_21], %60 {strides = array<i32>} : memref<8x128xf32, #tpu.memory_space<vmem>>, vector<8x128xf32>,
    return
  }
  func.func @transform_0(%arg0: i32) -> (i32, i32) {
    %c0_i32 = arith.constant 0 : i32
    %c0_i32_0 = arith.constant 0 : i32
    return %c0_i32, %arg0 : i32, i32
  }
  func.func @transform_1(%arg0: i32) -> (i32, i32) {
    %c0_i32 = arith.constant 0 : i32
    %c0_i32_0 = arith.constant 0 : i32
    return %c0_i32, %arg0 : i32, i32
  }
  func.func @transform_2(%arg0: i32) -> (i32, i32) {
    %c0_i32 = arith.constant 0 : i32
    %c0_i32_0 = arith.constant 0 : i32
    %c0_i32_1 = arith.constant 0 : i32
    return %c0_i32, %c0_i32_0 : i32, i32
  }
  func.func @transform_3(%arg0: i32) -> (i32, i32) {
    %c0_i32 = arith.constant 0 : i32
    %c0_i32_0 = arith.constant 0 : i32
    %c0_i32_1 = arith.constant 0 : i32
    return %c0_i32, %c0_i32_0 : i32, i32
  }
  func.func @transform_4(%arg0: i32) -> (i32, i32) {
    %c0_i32 = arith.constant 0 : i32
    %c0_i32_0 = arith.constant 0 : i32
    %c0_i32_1 = arith.constant 0 : i32
    return %c0_i32, %c0_i32_0 : i32, i32
  }
}

</mosaic_0001>

<bundles_post_ra>
// kernel: tpu_custom_call.1
= control target key start
LH: loop header
LB: loop body
LE: loop exit
PB: predicated region body
PF: predicated region fallthrough
CT: control target
= control target key end

     0   :  { %vm783_vm0 = vcmask 1041408   ;;  %v2190_v2 = vmov 0.0|0.0   ;;  %v2191_v5 = vmov 0.0   ;;  %vm26_vm1 = vcmask 64512   ;;  %s2741_s0 = inlined_call_operand.vmem [shape: f32[8,128], index: 0, kind: input, shape index: {}]   ;;  %s2742_s1 = inlined_call_operand.vmem [shape: f32[10,128], index: 1, kind: input, shape index: {}]   ;;  %s2743_s2 = inlined_call_operand.vmem [shape: f32[56,8], index: 2, kind: input, shape index: {}]   ;;  %s2744_s3 = inlined_call_operand.vmem [shape: f32[56,10], index: 3, kind: input, shape index: {}]   ;;  %s2745_s4 = inlined_call_operand.hbm [shape: f32[8,128], index: 4, kind: output, shape index: {}]  }
   0x1   :  { %v759_v0 = vld [vmem:[%s2742_s1] sm:$0xff]  ;;  %v760_v1 = vld [vmem:[%s2742_s1 + $0x8] sm:$0x3]  ;;  %2001 = vmatprep.subr.bf16.mxu1 %v2190_v2  ;;  %1713 = vmatprep.subr.mxu0 %v2191_v5  ;;  %vm2192_vm2 = vmmov 0   ;;  %vm761_vm3 = vcmask 80896   ;;  %v20_v22 = vld [vmem:[%s2743_s2 + $0x10] sm:$0xff] }
   0x2   :  { %v785_v3 = vsel %vm783_vm0, %v760_v1, 0  ;;  %v788_v4 = vand.u32 4294901760, %v759_v0  ;;  %v25_v6 = vld [vmem:[%s2741_s0] sm:$0xff]  ;;  %1715 = vmatprep.mubr.msk.f32.mxu0 %vm2192_vm2, %v2191_v5  ;;  %1855 = vmatprep.mubr.msk.f32.mxu1 %vm2192_vm2, %v2191_v5  ;;  %v19_v12 = vld [vmem:[%s2743_s2 + $0x8] sm:$0xff]  ;;  %v34_v34 = vsel %vm26_vm1, %v20_v22, 0 }
   0x3   :  { %v18_v7 = vld [vmem:[%s2743_s2] sm:$0xff]  ;;  %v791_v8 = vand.u32 4294901760, %v785_v3  ;;  %v2234_v9 = vand.u32 4294901760, %v25_v6  ;;  %v31_v16 = vsel %vm26_vm1, %v19_v12, 0  ;;  %v753_v17 = vld [vmem:[%s2744_s3 + $0x8] sm:$0xff] }
   0x4   :  { %v28_v10 = vsel %vm26_vm1, %v18_v7, 0  ;;  %v752_v11 = vld [vmem:[%s2744_s3] sm:$0xff]  ;;  %v2247_v13 = vsub.f32 %v759_v0, %v788_v4  ;;  %v2274_v25 = vand.u32 4294901760, %v31_v16  ;;  %v766_v26 = vsel %vm761_vm3, %v753_v17, 0 }
   0x5   :  { %v2249_v14 = vand.u32 4294901760, %v28_v10  ;;  %v763_v15 = vsel %vm761_vm3, %v752_v11, 0  ;;  %v2256_v18 = vpack.c.bf16 %v791_v8, %v788_v4  ;;  %v2258_v19 = vsub.f32 %v785_v3, %v791_v8  ;;  %1714 = vmatpush3.msra.mxu0 %v2234_v9 }
   0x6   :  { %v2262_v20 = vsub.f32 %v25_v6, %v2234_v9  ;;  %v2264_v21 = vand.u32 4294901760, %v763_v15  ;;  %1736 = vmatprep.subr.mxu0 %v2191_v5  ;;  %v927_v24 = vand.u32 4294901760, %v2247_v13  ;;  %v2283_v30 = vand.u32 4294901760, %v766_v26 }
   0x7   :  { %v2270_v23 = vsub.f32 %v28_v10, %v2249_v14  ;;  %2003 = vmatpush3.bf16.msra.mxu1 %v2256_v18  ;;  %v934_v29 = vand.u32 4294901760, %v2258_v19  ;;  %v2291_v33 = vsub.f32 %v31_v16, %v2274_v25 }
   0x8   :  { %v2279_v27 = vsub.f32 %v763_v15, %v2264_v21  ;;  %v187_v28 = vand.u32 4294901760, %v2262_v20  ;;  %2004 = vmatprep.subr.bf16.mxu1 %v2190_v2  ;;  %v928_v32 = vsub.f32 %v2247_v13, %v927_v24 }
   0x9   :  { %v116_v31 = vand.u32 4294901760, %v2270_v23 }
   0xa   :  { %9 = vsyncpa [#allocation3], 0  ;;  %v856_v35 = vand.u32 4294901760, %v2279_v27  ;;  %v188_v36 = vsub.f32 %v2262_v20, %v187_v28  ;;  %v935_v37 = vsub.f32 %v2258_v19, %v934_v29  ;;  %v2302_v38 = vsub.f32 %v766_v26, %v2283_v30  ;;  %v754_v39 = vld [vmem:[%s2744_s3 + $0x10] sm:$0xff]  ;;  %v21_v48 = vld [vmem:[%s2743_s2 + $0x18] sm:$0xff] }
   0xb   :  { %v117_v40 = vsub.f32 %v2270_v23, %v116_v31  ;;  %v929_v41 = vand.u32 4294901760, %v928_v32  ;;  %v126_v42 = vand.u32 4294901760, %v2291_v33  ;;  %v2311_v43 = vand.u32 4294901760, %v34_v34  ;;  %v755_v49 = vld [vmem:[%s2744_s3 + $0x18] sm:$0xff]  ;;  %v22_v58 = vld [vmem:[%s2743_s2 + $0x20] sm:$0xff]  ;;  %v23_v60 = vld [vmem:[%s2743_s2 + $0x28] sm:$0xff] }
   0xc   :  { %v857_v44 = vsub.f32 %v2279_v27, %v856_v35  ;;  %v189_v45 = vand.u32 4294901760, %v188_v36  ;;  %v936_v46 = vand.u32 4294901760, %v935_v37  ;;  %v866_v47 = vand.u32 4294901760, %v2302_v38  ;;  %v756_v59 = vld [vmem:[%s2744_s3 + $0x20] sm:$0xff]  ;;  %v757_v7 = vld [vmem:[%s2744_s3 + $0x28] sm:$0xff]  ;;  %v24_v26 = vld [vmem:[%s2743_s2 + $0x30] sm:$0xff] }
   0xd   :  { %v118_v50 = vand.u32 4294901760, %v117_v40  ;;  %v127_v51 = vsub.f32 %v2291_v33, %v126_v42  ;;  %v2327_v52 = vsub.f32 %v34_v34, %v2311_v43  ;;  %v769_v53 = vsel %vm761_vm3, %v754_v39, 0 }
   0xe   :  { %v858_v54 = vand.u32 4294901760, %v857_v44  ;;  %v2005_v55 = vpack.c.bf16 %v936_v46, %v929_v41  ;;  %v867_v56 = vsub.f32 %v2302_v38, %v866_v47  ;;  %v2333_v57 = vand.u32 4294901760, %v769_v53 }
   0xf   :  { %1716 = vmatmul.mubr.f32.vlgmr.msra.gmra.mrb[0].mxu0 %v118_v50  ;;  %v128_v61 = vand.u32 4294901760, %v127_v51  ;;  %v136_v62 = vand.u32 4294901760, %v2327_v52  ;;  %v37_v63 = vsel %vm26_vm1, %v21_v48, 0  ;;  %v772_v0 = vsel %vm761_vm3, %v755_v49, 0  ;;  %v758_v50 = vld [vmem:[%s2744_s3 + $0x30] sm:$0xff]  ;;  %s2194_s3 = smov [#allocation2]  }
  0x10   :  { %1856 = vmatmul.mubr.f32.vlgmr.msra.gmra.mrb[0].mxu1 %v858_v54  ;;  %1737 = vmatpush3.msra.mxu0 %v189_v45  ;;  %v868_v1 = vand.u32 4294901760, %v867_v56  ;;  %v2348_v3 = vsub.f32 %v769_v53, %v2333_v57  ;;  %v2350_v4 = vand.u32 4294901760, %v37_v63  ;;  %v2352_v6 = vand.u32 4294901760, %v772_v0  ;;  %s1596_s20 = sshll.u32 %s2194_s3, 4  ;;  %s1597_s20 = int_to_ptr.vmem [resolvable:$true] %s1596_s20 }
  0x11   :  { %2006 = vmatpush3.bf16.msra.mxu1 %v2005_v55  ;;  %1718 = vmatprep.mubr.msk.f32.mxu0 %vm2192_vm2, %v2191_v5  ;;  %v137_v8 = vsub.f32 %v2327_v52, %v136_v62  ;;  %v40_v10 = vsel %vm26_vm1, %v22_v58, 0  ;;  %v775_v11 = vsel %vm761_vm3, %v756_v59, 0  ;;  %v43_v12 = vsel %vm26_vm1, %v23_v60, 0  ;;  %s2166_s21 = scalar_lea.vmem %s1597_s20, 128  ;;  %p2171_p1 = scmp.lt.s32.totalorder %s1597_s20, %s1597_s20 }
  0x12   :  { %1858 = vmatprep.mubr.msk.f32.mxu1 %vm2192_vm2, %v2191_v5  ;;  %v876_v15 = vand.u32 4294901760, %v2348_v3  ;;  %v2369_v16 = vsub.f32 %v37_v63, %v2350_v4  ;;  %v2372_v17 = vsub.f32 %v772_v0, %v2352_v6  ;;  %v2374_v22 = vand.u32 4294901760, %v40_v10  ;;  %1759 = vmatprep.subr.mxu0 %v2191_v5  ;;  %p2167_p0 = scmp.ne.s32.totalorder %s1597_s20, %s2166_s21  ;;  %p2172_p2 = scmp.lt.s32.totalorder %s2166_s21, %s2166_s21 }
  0x13   :  { %1719 = vmatmul.mubr.f32.gmra.mrb[2].mxu0 %v128_v61  ;;  %v138_v32 = vand.u32 4294901760, %v137_v8  ;;  %v2380_v34 = vand.u32 4294901760, %v775_v11  ;;  %v2382_v36 = vand.u32 4294901760, %v43_v12  ;;  %v778_v37 = vsel %vm761_vm3, %v757_v7, 0  ;;  %2007 = vmatprep.subr.bf16.mxu1 %v2190_v2 }
  0x14   :  { %1859 = vmatmul.mubr.f32.gmra.mrb[2].mxu1 %v868_v1  ;;  %1721 = vmatprep.mubr.msk.f32.mxu0 %vm2192_vm2, %v2191_v5  ;;  %v877_v39 = vsub.f32 %v2348_v3, %v876_v15  ;;  %v146_v40 = vand.u32 4294901760, %v2369_v16  ;;  %v886_v41 = vand.u32 4294901760, %v2372_v17  ;;  %v2394_v44 = vsub.f32 %v40_v10, %v2374_v22  ;;  %p2173_p3 = por %p2172_p2, %p2171_p1 }
  0x15   :  { %1861 = vmatprep.mubr.msk.f32.mxu1 %vm2192_vm2, %v2191_v5  ;;  %v2399_v45 = vsub.f32 %v775_v11, %v2380_v34  ;;  %v2402_v46 = vsub.f32 %v43_v12, %v2382_v36  ;;  %v2404_v48 = vand.u32 4294901760, %v778_v37  ;;  %v46_v49 = vsel %vm26_vm1, %v24_v26, 0 }
  0x16   :  { %v878_v51 = vand.u32 4294901760, %v877_v39  ;;  %v147_v53 = vsub.f32 %v2369_v16, %v146_v40  ;;  %v887_v54 = vsub.f32 %v2372_v17, %v886_v41  ;;  %v156_v55 = vand.u32 4294901760, %v2394_v44  ;;  %p2174_p4 = pnand %p2173_p3, %p2167_p0 }
  0x17   :  { %1722 = vmatmul.mubr.f32.gmra.mrb[4].mxu0 %v138_v32  ;;  %v896_v56 = vand.u32 4294901760, %v2399_v45  ;;  %v166_v58 = vand.u32 4294901760, %v2402_v46  ;;  %v2420_v59 = vsub.f32 %v778_v37, %v2404_v48  ;;  %v2422_v60 = vand.u32 4294901760, %v46_v49 }
  0x18   :  { %1862 = vmatmul.mubr.f32.gmra.mrb[4].mxu1 %v878_v51  ;;  %1724 = vmatprep.mubr.msk.f32.mxu0 %vm2192_vm2, %v2191_v5  ;;  %v148_v61 = vand.u32 4294901760, %v147_v53  ;;  %v888_v63 = vand.u32 4294901760, %v887_v54  ;;  %v157_v0 = vsub.f32 %v2394_v44, %v156_v55  ;;  %v781_v1 = vsel %vm761_vm3, %v758_v50, 0 }
  0x19   :  { %1864 = vmatprep.mubr.msk.f32.mxu1 %vm2192_vm2, %v2191_v5  ;;  %v897_v7 = vsub.f32 %v2399_v45, %v896_v56  ;;  %v906_v8 = vand.u32 4294901760, %v2420_v59  ;;  %v2437_v10 = vsub.f32 %v46_v49, %v2422_v60  ;;  %v2439_v11 = vand.u32 4294901760, %v781_v1 }
  0x1a   :  { %v2445_v12 = vpack.c.bf16 %v934_v29, %v927_v24  ;;  %v158_v26 = vand.u32 4294901760, %v157_v0  ;;  %v167_v32 = vsub.f32 %v2402_v46, %v166_v58  ;;  %v2008_v0 = vpack.c.bf16 %v2258_v19, %v2247_v13 }
  0x1b   :  { %1725 = vmatmul.mubr.f32.gmra.mrb[6].mxu0 %v148_v61  ;;  %v176_v37 = vand.u32 4294901760, %v2437_v10  ;;  %v898_v39 = vand.u32 4294901760, %v897_v7  ;;  %v907_v49 = vsub.f32 %v2420_v59, %v906_v8  ;;  %v2457_v24 = vsub.f32 %v781_v1, %v2439_v11 }
  0x1c   :  { %1865 = vmatmul.mubr.f32.gmra.mrb[6].mxu1 %v888_v63  ;;  %1727 = vmatprep.mubr.msk.f32.mxu0 %vm2192_vm2, %v2191_v5  ;;  %v168_v50 = vand.u32 4294901760, %v167_v32 }
  0x1d   :  { %1867 = vmatprep.mubr.msk.f32.mxu1 %vm2192_vm2, %v2191_v5  ;;  %v916_v29 = vand.u32 4294901760, %v2457_v24  ;;  %v177_v51 = vsub.f32 %v2437_v10, %v176_v37  ;;  %v908_v53 = vand.u32 4294901760, %v907_v49 }
  0x1f   :  { %1728 = vmatmul.mubr.f32.gmra.mrb[8].mxu0 %v158_v26  ;;  %v917_v54 = vsub.f32 %v2457_v24, %v916_v29  ;;  %v178_v61 = vand.u32 4294901760, %v177_v51 }
  0x20   :  { %1868 = vmatmul.mubr.f32.gmra.mrb[8].mxu1 %v898_v39  ;;  %1730 = vmatprep.mubr.msk.f32.mxu0 %vm2192_vm2, %v2191_v5 }
  0x21   :  { %1870 = vmatprep.mubr.msk.f32.mxu1 %vm2192_vm2, %v2191_v5  ;;  %v918_v63 = vand.u32 4294901760, %v917_v54 }
  0x23   :  { %1731 = vmatmul.mubr.f32.gmra.mrb[10].mxu0 %v168_v50 }
  0x24   :  { %1871 = vmatmul.mubr.f32.gmra.mrb[10].mxu1 %v908_v53  ;;  %1733 = vmatprep.mubr.msk.f32.mxu0 %vm2192_vm2, %v2191_v5 }
  0x25   :  { %1873 = vmatprep.mubr.msk.f32.mxu1 %vm2192_vm2, %v2191_v5 }
  0x27   :  { %1734 = vmatmul.mubr.f32.gmra.mrb[12].mxu0 %v178_v61 }
  0x28   :  { %1874 = vmatmul.mubr.f32.gmra.mrb[12].mxu1 %v918_v63  ;;  %1738 = vmatprep.mubr.msk.f32.mxu0 %vm2192_vm2, %v2191_v5 }
  0x29   :  { %1880 = vmatprep.mubr.msk.f32.mxu1 %vm2192_vm2, %v2191_v5 }
  0x2b   :  { %1739 = vmatmul.mubr.f32.vlgmr.msra.gmra.mrb[0].mxu0 %v2249_v14 }
  0x2c   :  { %1881 = vmatmul.mubr.f32.vlgmr.msra.gmra.mrb[0].mxu1 %v2264_v21  ;;  %1760 = vmatpush3.msra.mxu0 %v2262_v20 }
  0x2d   :  { %2009 = vmatpush3.bf16.msra.mxu1 %v2008_v0  ;;  %1741 = vmatprep.mubr.msk.f32.mxu0 %vm2192_vm2, %v2191_v5 }
  0x2e   :  { %1883 = vmatprep.mubr.msk.f32.mxu1 %vm2192_vm2, %v2191_v5  ;;  %1782 = vmatprep.subr.mxu0 %v2191_v5 }
  0x2f   :  { %1742 = vmatmul.mubr.f32.gmra.mrb[2].mxu0 %v2274_v25  ;;  %2010 = vmatprep.subr.bf16.mxu1 %v2190_v2 }
  0x30   :  { %1884 = vmatmul.mubr.f32.gmra.mrb[2].mxu1 %v2283_v30  ;;  %1744 = vmatprep.mubr.msk.f32.mxu0 %vm2192_vm2, %v2191_v5 }
  0x31   :  { %1886 = vmatprep.mubr.msk.f32.mxu1 %vm2192_vm2, %v2191_v5 }
  0x33   :  { %1745 = vmatmul.mubr.f32.gmra.mrb[4].mxu0 %v2311_v43 }
  0x34   :  { %1887 = vmatmul.mubr.f32.gmra.mrb[4].mxu1 %v2333_v57  ;;  %1747 = vmatprep.mubr.msk.f32.mxu0 %vm2192_vm2, %v2191_v5 }
  0x35   :  { %1889 = vmatprep.mubr.msk.f32.mxu1 %vm2192_vm2, %v2191_v5 }
  0x37   :  { %1748 = vmatmul.mubr.f32.gmra.mrb[6].mxu0 %v2350_v4 }
  0x38   :  { %1890 = vmatmul.mubr.f32.gmra.mrb[6].mxu1 %v2352_v6  ;;  %1750 = vmatprep.mubr.msk.f32.mxu0 %vm2192_vm2, %v2191_v5 }
  0x39   :  { %1892 = vmatprep.mubr.msk.f32.mxu1 %vm2192_vm2, %v2191_v5 }
  0x3b   :  { %1751 = vmatmul.mubr.f32.gmra.mrb[8].mxu0 %v2374_v22 }
  0x3c   :  { %1893 = vmatmul.mubr.f32.gmra.mrb[8].mxu1 %v2380_v34  ;;  %1753 = vmatprep.mubr.msk.f32.mxu0 %vm2192_vm2, %v2191_v5 }
  0x3d   :  { %1895 = vmatprep.mubr.msk.f32.mxu1 %vm2192_vm2, %v2191_v5 }
  0x3f   :  { %1754 = vmatmul.mubr.f32.gmra.mrb[10].mxu0 %v2382_v36 }
  0x40   :  { %1896 = vmatmul.mubr.f32.gmra.mrb[10].mxu1 %v2404_v48  ;;  %1756 = vmatprep.mubr.msk.f32.mxu0 %vm2192_vm2, %v2191_v5 }
  0x41   :  { %1898 = vmatprep.mubr.msk.f32.mxu1 %vm2192_vm2, %v2191_v5 }
  0x43   :  { %1757 = vmatmul.mubr.f32.gmra.mrb[12].mxu0 %v2422_v60 }
  0x44   :  { %1899 = vmatmul.mubr.f32.gmra.mrb[12].mxu1 %v2439_v11  ;;  %1761 = vmatprep.mubr.msk.f32.mxu0 %vm2192_vm2, %v2191_v5 }
  0x45   :  { %1905 = vmatprep.mubr.msk.f32.mxu1 %vm2192_vm2, %v2191_v5 }
  0x47   :  { %1762 = vmatmul.mubr.f32.vlgmr.msra.gmra.mrb[0].mxu0 %v2270_v23 }
  0x48   :  { %1906 = vmatmul.mubr.f32.vlgmr.msra.gmra.mrb[0].mxu1 %v2279_v27  ;;  %1783 = vmatpush3.msra.mxu0 %v2234_v9  ;;  %v2193_v27 = vmov 1.0  }
  0x49   :  { %2012 = vmatpush3.bf16.msra.mxu1 %v2256_v18  ;;  %1764 = vmatprep.mubr.msk.f32.mxu0 %vm2192_vm2, %v2191_v5 }
  0x4a   :  { %1908 = vmatprep.mubr.msk.f32.mxu1 %vm2192_vm2, %v2191_v5  ;;  %1805 = vmatprep.subr.mxu0 %v2191_v5 }
  0x4b   :  { %1765 = vmatmul.mubr.f32.gmra.mrb[2].mxu0 %v2291_v33  ;;  %2013 = vmatprep.subr.bf16.mxu1 %v2190_v2 }
  0x4c   :  { %1909 = vmatmul.mubr.f32.gmra.mrb[2].mxu1 %v2302_v38  ;;  %1767 = vmatprep.mubr.msk.f32.mxu0 %vm2192_vm2, %v2191_v5 }
  0x4d   :  { %1911 = vmatprep.mubr.msk.f32.mxu1 %vm2192_vm2, %v2191_v5 }
  0x4f   :  { %1768 = vmatmul.mubr.f32.gmra.mrb[4].mxu0 %v2327_v52 }
  0x50   :  { %1912 = vmatmul.mubr.f32.gmra.mrb[4].mxu1 %v2348_v3  ;;  %1770 = vmatprep.mubr.msk.f32.mxu0 %vm2192_vm2, %v2191_v5 }
  0x51   :  { %1914 = vmatprep.mubr.msk.f32.mxu1 %vm2192_vm2, %v2191_v5 }
  0x53   :  { %1771 = vmatmul.mubr.f32.gmra.mrb[6].mxu0 %v2369_v16 }
  0x54   :  { %1915 = vmatmul.mubr.f32.gmra.mrb[6].mxu1 %v2372_v17  ;;  %1773 = vmatprep.mubr.msk.f32.mxu0 %vm2192_vm2, %v2191_v5 }
  0x55   :  { %1917 = vmatprep.mubr.msk.f32.mxu1 %vm2192_vm2, %v2191_v5 }
  0x57   :  { %1774 = vmatmul.mubr.f32.gmra.mrb[8].mxu0 %v2394_v44 }
  0x58   :  { %1918 = vmatmul.mubr.f32.gmra.mrb[8].mxu1 %v2399_v45  ;;  %1776 = vmatprep.mubr.msk.f32.mxu0 %vm2192_vm2, %v2191_v5 }
  0x59   :  { %1920 = vmatprep.mubr.msk.f32.mxu1 %vm2192_vm2, %v2191_v5 }
  0x5b   :  { %1777 = vmatmul.mubr.f32.gmra.mrb[10].mxu0 %v2402_v46 }
  0x5c   :  { %1921 = vmatmul.mubr.f32.gmra.mrb[10].mxu1 %v2420_v59  ;;  %1779 = vmatprep.mubr.msk.f32.mxu0 %vm2192_vm2, %v2191_v5 }
  0x5d   :  { %1923 = vmatprep.mubr.msk.f32.mxu1 %vm2192_vm2, %v2191_v5 }
  0x5f   :  { %1780 = vmatmul.mubr.f32.gmra.mrb[12].mxu0 %v2437_v10 }
  0x60   :  { %1924 = vmatmul.mubr.f32.gmra.mrb[12].mxu1 %v2457_v24  ;;  %1784 = vmatprep.mubr.msk.f32.mxu0 %vm2192_vm2, %v2191_v5 }
  0x61   :  { %1930 = vmatprep.mubr.msk.f32.mxu1 %vm2192_vm2, %v2191_v5 }
  0x63   :  { %1785 = vmatmul.mubr.f32.vlgmr.msra.gmra.mrb[0].mxu0 %v116_v31 }
  0x64   :  { %1931 = vmatmul.mubr.f32.vlgmr.msra.gmra.mrb[0].mxu1 %v856_v35  ;;  %1806 = vmatpush3.msra.mxu0 %v187_v28 }
  0x65   :  { %2015 = vmatpush3.bf16.msra.mxu1 %v2445_v12  ;;  %1787 = vmatprep.mubr.msk.f32.mxu0 %vm2192_vm2, %v2191_v5 }
  0x66   :  { %1933 = vmatprep.mubr.msk.f32.mxu1 %vm2192_vm2, %v2191_v5  ;;  %1828 = vmatprep.subr.mxu0 %v2191_v5 }
  0x67   :  { %1788 = vmatmul.mubr.f32.gmra.mrb[2].mxu0 %v126_v42  ;;  %2016 = vmatprep.subr.bf16.mxu1 %v2190_v2  ;;  %v1511_v2 = vlaneseq }
  0x68   :  { %1934 = vmatmul.mubr.f32.gmra.mrb[2].mxu1 %v866_v47  ;;  %1790 = vmatprep.mubr.msk.f32.mxu0 %vm2192_vm2, %v2191_v5 }
  0x69   :  { %1936 = vmatprep.mubr.msk.f32.mxu1 %vm2192_vm2, %v2191_v5 }
  0x6b   :  { %1791 = vmatmul.mubr.f32.gmra.mrb[4].mxu0 %v136_v62 }
  0x6c   :  { %1937 = vmatmul.mubr.f32.gmra.mrb[4].mxu1 %v876_v15  ;;  %1793 = vmatprep.mubr.msk.f32.mxu0 %vm2192_vm2, %v2191_v5 }
  0x6d   :  { %1939 = vmatprep.mubr.msk.f32.mxu1 %vm2192_vm2, %v2191_v5 }
  0x6f   :  { %1794 = vmatmul.mubr.f32.gmra.mrb[6].mxu0 %v146_v40 }
  0x70   :  { %1940 = vmatmul.mubr.f32.gmra.mrb[6].mxu1 %v886_v41  ;;  %1796 = vmatprep.mubr.msk.f32.mxu0 %vm2192_vm2, %v2191_v5 }
  0x71   :  { %1942 = vmatprep.mubr.msk.f32.mxu1 %vm2192_vm2, %v2191_v5 }
  0x73   :  { %1797 = vmatmul.mubr.f32.gmra.mrb[8].mxu0 %v156_v55 }
  0x74   :  { %1943 = vmatmul.mubr.f32.gmra.mrb[8].mxu1 %v896_v56  ;;  %1799 = vmatprep.mubr.msk.f32.mxu0 %vm2192_vm2, %v2191_v5 }
  0x75   :  { %1945 = vmatprep.mubr.msk.f32.mxu1 %vm2192_vm2, %v2191_v5 }
  0x77   :  { %1800 = vmatmul.mubr.f32.gmra.mrb[10].mxu0 %v166_v58 }
  0x78   :  { %1946 = vmatmul.mubr.f32.gmra.mrb[10].mxu1 %v906_v8  ;;  %1802 = vmatprep.mubr.msk.f32.mxu0 %vm2192_vm2, %v2191_v5 }
  0x79   :  { %1948 = vmatprep.mubr.msk.f32.mxu1 %vm2192_vm2, %v2191_v5 }
  0x7b   :  { %1803 = vmatmul.mubr.f32.gmra.mrb[12].mxu0 %v176_v37 }
  0x7c   :  { %1949 = vmatmul.mubr.f32.gmra.mrb[12].mxu1 %v916_v29  ;;  %1807 = vmatprep.mubr.msk.f32.mxu0 %vm2192_vm2, %v2191_v5 }
  0x7d   :  { %1955 = vmatprep.mubr.msk.f32.mxu1 %vm2192_vm2, %v2191_v5 }
  0x7f   :  { %1808 = vmatmul.mubr.f32.vlgmr.msra.gmra.mrb[0].mxu0 %v2249_v14 }
  0x80   :  { %1956 = vmatmul.mubr.f32.vlgmr.msra.gmra.mrb[0].mxu1 %v2264_v21  ;;  %1829 = vmatpush3.msra.mxu0 %v2234_v9  ;;  %v1512_v9 = vand.u32 127, %v1511_v2 }
  0x81   :  { %2018 = vmatpush3.bf16.msra.mxu1 %v2256_v18  ;;  %1810 = vmatprep.mubr.msk.f32.mxu0 %vm2192_vm2, %v2191_v5 }
  0x82   :  { %1958 = vmatprep.mubr.msk.f32.mxu1 %vm2192_vm2, %v2191_v5 }
  0x83   :  { %1811 = vmatmul.mubr.f32.gmra.mrb[2].mxu0 %v2274_v25 }
  0x84   :  { %1959 = vmatmul.mubr.f32.gmra.mrb[2].mxu1 %v2283_v30  ;;  %1813 = vmatprep.mubr.msk.f32.mxu0 %vm2192_vm2, %v2191_v5 }
  0x85   :  { %1961 = vmatprep.mubr.msk.f32.mxu1 %vm2192_vm2, %v2191_v5 }
  0x87   :  { %1814 = vmatmul.mubr.f32.gmra.mrb[4].mxu0 %v2311_v43 }
  0x88   :  { %1962 = vmatmul.mubr.f32.gmra.mrb[4].mxu1 %v2333_v57  ;;  %1816 = vmatprep.mubr.msk.f32.mxu0 %vm2192_vm2, %v2191_v5 }
  0x89   :  { %1964 = vmatprep.mubr.msk.f32.mxu1 %vm2192_vm2, %v2191_v5 }
  0x8b   :  { %1817 = vmatmul.mubr.f32.gmra.mrb[6].mxu0 %v2350_v4 }
  0x8c   :  { %1965 = vmatmul.mubr.f32.gmra.mrb[6].mxu1 %v2352_v6  ;;  %1819 = vmatprep.mubr.msk.f32.mxu0 %vm2192_vm2, %v2191_v5 }
  0x8d   :  { %1967 = vmatprep.mubr.msk.f32.mxu1 %vm2192_vm2, %v2191_v5 }
  0x8f   :  { %1820 = vmatmul.mubr.f32.gmra.mrb[8].mxu0 %v2374_v22 }
  0x90   :  { %1968 = vmatmul.mubr.f32.gmra.mrb[8].mxu1 %v2380_v34  ;;  %1822 = vmatprep.mubr.msk.f32.mxu0 %vm2192_vm2, %v2191_v5 }
  0x91   :  { %1970 = vmatprep.mubr.msk.f32.mxu1 %vm2192_vm2, %v2191_v5 }
  0x93   :  { %1823 = vmatmul.mubr.f32.gmra.mrb[10].mxu0 %v2382_v36 }
  0x94   :  { %1971 = vmatmul.mubr.f32.gmra.mrb[10].mxu1 %v2404_v48  ;;  %1825 = vmatprep.mubr.msk.f32.mxu0 %vm2192_vm2, %v2191_v5 }
  0x95   :  { %1973 = vmatprep.mubr.msk.f32.mxu1 %vm2192_vm2, %v2191_v5 }
  0x97   :  { %1826 = vmatmul.mubr.f32.gmra.mrb[12].mxu0 %v2422_v60 }
  0x98   :  { %1974 = vmatmul.mubr.f32.gmra.mrb[12].mxu1 %v2439_v11  ;;  %1830 = vmatprep.mubr.msk.f32.mxu0 %vm2192_vm2, %v2191_v5 }
  0x99   :  { %1980 = vmatprep.mubr.msk.f32.mxu1 %vm2192_vm2, %v2191_v5 }
  0x9b   :  { %1831 = vmatmul.mubr.f32.vlgmr.msra.gmra.mrb[0].mxu0 %v2249_v14  ;;  %v2716_v13 = vmul.u32.u64.low 2863311531, %v1512_v9  ;;  %v2717_v14 = vmul.u32.u64.high 2863311531, %v1512_v9, %v2716_v13 }
  0x9c   :  { %1981 = vmatmul.mubr.f32.vlgmr.msra.gmra.mrb[0].mxu1 %v2264_v21  ;;  %1833 = vmatprep.mubr.msk.f32.mxu0 %vm2192_vm2, %v2191_v5 }
  0x9d   :  { %1983 = vmatprep.mubr.msk.f32.mxu1 %vm2192_vm2, %v2191_v5  ;;  %v1522_v18 = vshrl.u32 %v2717_v14, 1 }
  0x9f   :  { %1834 = vmatmul.mubr.f32.gmra.mrb[2].mxu0 %v2274_v25  ;;  %v1523_v19 = vmul.u32 3, %v1522_v18 }
  0xa0   :  { %1984 = vmatmul.mubr.f32.gmra.mrb[2].mxu1 %v2283_v30  ;;  %1836 = vmatprep.mubr.msk.f32.mxu0 %vm2192_vm2, %v2191_v5 }
  0xa1   :  { %1986 = vmatprep.mubr.msk.f32.mxu1 %vm2192_vm2, %v2191_v5  ;;  %v1524_v20 = vsub.s32 %v1512_v9, %v1523_v19 }
  0xa3   :  { %1837 = vmatmul.mubr.f32.gmra.mrb[4].mxu0 %v2311_v43  ;;  %vm1527_vm4 = vcmp.ne.s32.totalorder %v1524_v20, 0  ;;  %vm1528_vm5 = vcmp.lt.s32.totalorder %v1524_v20, 0  ;;  %v1530_v21 = vadd.s32 3, %v1524_v20 }
  0xa4   :  { %1987 = vmatmul.mubr.f32.gmra.mrb[4].mxu1 %v2333_v57  ;;  %1839 = vmatprep.mubr.msk.f32.mxu0 %vm2192_vm2, %v2191_v5  ;;  %vm1529_vm6 = vmand %vm1528_vm5, %vm1527_vm4 }
  0xa5   :  { %1989 = vmatprep.mubr.msk.f32.mxu1 %vm2192_vm2, %v2191_v5  ;;  %v1531_v23 = vsel %vm1529_vm6, %v1530_v21, %v1524_v20 }
  0xa6   :  { %vm1532_vm7 = vcmp.eq.s32.totalorder %v1531_v23, 2 }
  0xa7   :  { %1840 = vmatmul.mubr.f32.gmra.mrb[6].mxu0 %v2350_v4  ;;  %v2720_v28 = vsel %vm1532_vm7, 0.15915494, %v2193_v27 }
  0xa8   :  { %1990 = vmatmul.mubr.f32.gmra.mrb[6].mxu1 %v2352_v6  ;;  %1842 = vmatprep.mubr.msk.f32.mxu0 %vm2192_vm2, %v2191_v5 }
  0xa9   :  { %1992 = vmatprep.mubr.msk.f32.mxu1 %vm2192_vm2, %v2191_v5 }
  0xab   :  { %1843 = vmatmul.mubr.f32.gmra.mrb[8].mxu0 %v2374_v22 }
  0xac   :  { %1993 = vmatmul.mubr.f32.gmra.mrb[8].mxu1 %v2380_v34  ;;  %1845 = vmatprep.mubr.msk.f32.mxu0 %vm2192_vm2, %v2191_v5 }
  0xad   :  { %1995 = vmatprep.mubr.msk.f32.mxu1 %vm2192_vm2, %v2191_v5 }
  0xaf   :  { %1846 = vmatmul.mubr.f32.gmra.mrb[10].mxu0 %v2382_v36 }
  0xb0   :  { %1996 = vmatmul.mubr.f32.gmra.mrb[10].mxu1 %v2404_v48  ;;  %1848 = vmatprep.mubr.msk.f32.mxu0 %vm2192_vm2, %v2191_v5 }
  0xb1   :  { %1998 = vmatprep.mubr.msk.f32.mxu1 %vm2192_vm2, %v2191_v5 }
  0xb3   :  { %1849 = vmatmul.mubr.f32.gmra.mrb[12].mxu0 %v2422_v60 }
  0xb4   :  { %1999 = vmatmul.mubr.f32.gmra.mrb[12].mxu1 %v2439_v11 }
 0x16e   :  { %v712_v5 = vpop.f32.mrb[0].mxu0 }
 0x16f   :  { %v1464_v25 = vpop.f32.mrb[0].mxu1  ;;  %v1832_v30 = vpop.f32.mrb[1].mxu0 }
 0x170   :  { %v1504_v31 = vsub.f32 %v712_v5, %v1464_v25  ;;  %v1982_v33 = vpop.f32.mrb[1].mxu1 }
 0x172   :  { %v1534_v35 = vmul.f32 %v2720_v28, %v1504_v31  ;;  %v718_v38 = vpop.f32.mrb[2].mxu0 }
 0x173   :  { %v1470_v42 = vpop.f32.mrb[2].mxu1  ;;  %v1835_v43 = vpop.f32.mrb[3].mxu0 }
 0x174   :  { %v1541_v47 = vand.u32 2147483647, %v1534_v35  ;;  %v1505_v52 = vsub.f32 %v718_v38, %v1470_v42  ;;  %v1985_v57 = vpop.f32.mrb[3].mxu1  ;;  %v1555_v34 = vmul.f32 %v1534_v35, %v1534_v35 }
 0x176   :  { %v1535_v62 = vmul.f32 %v2720_v28, %v1505_v52  ;;  %v724_v3 = vpop.f32.mrb[4].mxu0  ;;  %v1604_v15 = vadd.f32 -0.25, %v1541_v47  ;;  %vm1548_vm8 = vcmp.lt.f32.partialorder %v1541_v47, 0.5 }
 0x177   :  { %v1476_v4 = vpop.f32.mrb[4].mxu1  ;;  %v1838_v6 = vpop.f32.mrb[5].mxu0 }
 0x178   :  { %v1542_v16 = vand.u32 2147483647, %v1535_v62  ;;  %v1506_v17 = vsub.f32 %v724_v3, %v1476_v4  ;;  %v1988_v22 = vpop.f32.mrb[5].mxu1  ;;  %v1556_v36 = vmul.f32 %v1535_v62, %v1535_v62  ;;  %v1569_v48 = vsel %vm1548_vm8, %v1555_v34, %v1604_v15 }
 0x17a   :  { %vm1549_vm9 = vcmp.lt.f32.partialorder %v1542_v16, 0.5  ;;  %v1605_v40 = vadd.f32 -0.25, %v1542_v16  ;;  %v1536_v41 = vmul.f32 %v2720_v28, %v1506_v17  ;;  %v730_v44 = vpop.f32.mrb[6].mxu0 }
 0x17b   :  { %v1482_v45 = vpop.f32.mrb[6].mxu1  ;;  %v1841_v46 = vpop.f32.mrb[7].mxu0 }
 0x17c   :  { %v1570_v55 = vsel %vm1549_vm9, %v1556_v36, %v1605_v40  ;;  %v1543_v56 = vand.u32 2147483647, %v1536_v41  ;;  %v1507_v58 = vsub.f32 %v730_v44, %v1482_v45  ;;  %v1991_v59 = vpop.f32.mrb[7].mxu1  ;;  %v1557_v1 = vmul.f32 %v1536_v41, %v1536_v41 }
 0x17d   :  { %v1576_v60 = vadd.f32 %v1570_v55, %v1569_v48 }
 0x17e   :  { %vm1550_vm10 = vcmp.lt.f32.partialorder %v1543_v56, 0.5  ;;  %v1606_v7 = vadd.f32 -0.25, %v1543_v56  ;;  %v1537_v8 = vmul.f32 %v2720_v28, %v1507_v58  ;;  %v736_v10 = vpop.f32.mrb[8].mxu0 }
 0x17f   :  { %v1488_v11 = vpop.f32.mrb[8].mxu1  ;;  %v1844_v12 = vpop.f32.mrb[9].mxu0 }
 0x180   :  { %v1571_v26 = vsel %vm1550_vm10, %v1557_v1, %v1606_v7  ;;  %v1544_v32 = vand.u32 2147483647, %v1537_v8  ;;  %v1508_v37 = vsub.f32 %v736_v10, %v1488_v11  ;;  %v1994_v39 = vpop.f32.mrb[9].mxu1  ;;  %v1558_v24 = vmul.f32 %v1537_v8, %v1537_v8 }
 0x181   :  { %v1577_v49 = vadd.f32 %v1576_v60, %v1571_v26 }
 0x182   :  { %vm1551_vm11 = vcmp.lt.f32.partialorder %v1544_v32, 0.5  ;;  %v1607_v29 = vadd.f32 -0.25, %v1544_v32  ;;  %v1538_v50 = vmul.f32 %v2720_v28, %v1508_v37  ;;  %v742_v51 = vpop.f32.mrb[10].mxu0 }
 0x183   :  { %v1494_v53 = vpop.f32.mrb[10].mxu1  ;;  %v1847_v54 = vpop.f32.mrb[11].mxu0 }
 0x184   :  { %v1572_v61 = vsel %vm1551_vm11, %v1558_v24, %v1607_v29  ;;  %v1545_v63 = vand.u32 2147483647, %v1538_v50  ;;  %v1509_v0 = vsub.f32 %v742_v51, %v1494_v53  ;;  %v1997_v2 = vpop.f32.mrb[11].mxu1  ;;  %v1559_v13 = vmul.f32 %v1538_v50, %v1538_v50 }
 0x185   :  { %v1578_v9 = vadd.f32 %v1577_v49, %v1572_v61 }
 0x186   :  { %vm1552_vm12 = vcmp.lt.f32.partialorder %v1545_v63, 0.5  ;;  %v1608_v14 = vadd.f32 -0.25, %v1545_v63  ;;  %v1539_v18 = vmul.f32 %v2720_v28, %v1509_v0  ;;  %v748_v19 = vpop.f32.mrb[12].mxu0 }
 0x187   :  { %v1500_v20 = vpop.f32.mrb[12].mxu1  ;;  %v1850_v21 = vpop.f32.mrb[13].mxu0 }
 0x188   :  { %v1573_v23 = vsel %vm1552_vm12, %v1559_v13, %v1608_v14  ;;  %v1546_v5 = vand.u32 2147483647, %v1539_v18  ;;  %v1510_v25 = vsub.f32 %v748_v19, %v1500_v20  ;;  %v2000_v27 = vpop.f32.mrb[13].mxu1  ;;  %v1560_v31 = vmul.f32 %v1539_v18, %v1539_v18 }
 0x189   :  { %v1579_v30 = vadd.f32 %v1578_v9, %v1573_v23 }
 0x18a   :  { %vm1553_vm13 = vcmp.lt.f32.partialorder %v1546_v5, 0.5  ;;  %v1609_v33 = vadd.f32 -0.25, %v1546_v5  ;;  %v1540_v35 = vmul.f32 %v2720_v28, %v1510_v25 }
 0x18c   :  { %v1574_v38 = vsel %vm1553_vm13, %v1560_v31, %v1609_v33  ;;  %v1547_v42 = vand.u32 2147483647, %v1540_v35  ;;  %v1561_v47 = vmul.f32 %v1540_v35, %v1540_v35 }
 0x18d   :  { %v1580_v43 = vadd.f32 %v1579_v30, %v1574_v38 }
 0x18e   :  { %vm1554_vm14 = vcmp.lt.f32.partialorder %v1547_v42, 0.5  ;;  %v1610_v52 = vadd.f32 -0.25, %v1547_v42 }
 0x190   :  { %v1575_v57 = vsel %vm1554_vm14, %v1561_v47, %v1610_v52 }
 0x191   :  { %v1581_v62 = vadd.f32 %v1580_v43, %v1575_v57 }
 0x193   :  { %1589 = vst [vmem:[#allocation2] sm:$0xff] %v1581_v62 }
 0x194   :  { %2177 = shalt.err (!%p2174_p4)
}
 0x195   :  { %s2178_s23 = scalar_lea.hbm %s2745_s4, 128 }
 0x196   :  { %p2179_p5 = scmp.ne.s32.totalorder %s2745_s4, %s2178_s23  ;;  %p2182_p6 = scmp.lt.u32.totalorder %s2178_s23, %s2745_s4 }
 0x198   :  { %p2184_p7 = pnand %p2182_p6, %p2179_p5 }
 0x19a   :  { %2187 = shalt.err (!%p2184_p7)
}
 0x19b   :  { %1599 = dma.vmem_to_hbm [thread:$0]  %s1597_s20, 128, %s2745_s4, [#allocation3]  }
 0x19c   :  { %2188 = dma.done.wait [#allocation3], 128  }
 0x19d   :  { %2189 = vsyncadd [#allocation3], 4294967168 }
 0x19e   :  { %1603 = vsyncpa [#allocation3], 1 }

</bundles_post_ra>
